<compile_context>
chip_gen: v5e
topology: v5e:2x2
jax: 0.10.0
libtpu: 0.0.40
codegen_flags: <defaults>
</compile_context>

<pallas_src>
import functools

import jax
import jax.numpy as jnp
from jax.experimental import pallas as pl
from jax.experimental.pallas import tpu as pltpu


# Packed parameter layout (32 f32 scalars, resident in SMEM inside the kernel):
#   p[0:6]   = w1 (3, 2) row-major   -> w1[i, j] at      i*2 + j
#   p[6:8]   = b1 (2,)
#   p[8:24]  = wh = [wh1 | wh2] (2, 8) row-major -> wh[m, j] at 8 + m*8 + j
#   p[24:32] = bh = [bh1 | bh2] (8,)
_P_W1 = 0
_P_B1 = 6
_P_WH = 8
_P_BH = 24


def _multihead_kernel(p_ref, xT_ref, oT_ref):
    # p_ref : f32[32] in SMEM (scalars)
    # xT_ref: f32[3, Bt]  (batch on lanes)
    # oT_ref: f32[8, Bt]  (fused heads on sublanes, batch on lanes)
    x0 = xT_ref[0:1, :]
    x1 = xT_ref[1:2, :]
    x2 = xT_ref[2:3, :]

    # trunk: feat[:, j] = sum_i x[:, i] * w1[i, j] + b1[j]   (two-stage math kept)
    feat0 = (p_ref[_P_W1 + 0] * x0 + p_ref[_P_W1 + 2] * x1
             + p_ref[_P_W1 + 4] * x2 + p_ref[_P_B1 + 0])
    feat1 = (p_ref[_P_W1 + 1] * x0 + p_ref[_P_W1 + 3] * x1
             + p_ref[_P_W1 + 5] * x2 + p_ref[_P_B1 + 1])

    # fused heads: out[j, :] = wh[0, j]*feat0 + wh[1, j]*feat1 + bh[j]
    rows = [
        p_ref[_P_WH + j] * feat0 + p_ref[_P_WH + 8 + j] * feat1 + p_ref[_P_BH + j]
        for j in range(8)
    ]
    # one full-width, lane-dense (8, Bt) store
    oT_ref[...] = jnp.concatenate(rows, axis=0).astype(oT_ref.dtype)


def pack_params(params):
    """Fuse heads + flatten all params into a single f32[32] array.

    Do this ONCE at init / param-update time, not per forward call.
    """
    wh = jnp.concatenate([params["wh1"], params["wh2"]], axis=1)   # (2, 8)
    bh = jnp.concatenate([params["bh1"], params["bh2"]], axis=1)   # (1, 8)
    return jnp.concatenate([
        params["w1"].reshape(-1),     # 6
        params["b1"].reshape(-1),     # 2
        wh.reshape(-1),               # 16
        bh.reshape(-1),               # 8
    ]).astype(jnp.float32)            # (32,)


@functools.partial(jax.jit, static_argnames=("b_tile",))
def multihead_forward(x, packed_params, *, b_tile=512):
    """x: (B, 3) float32; packed_params: f32[32] from pack_params().

    Returns (head1, head2), each (B, 4) float32.
    """
    B = x.shape[0]
    xT = x.astype(jnp.float32).T                       # (3, B) — batch on lanes

    if B <= b_tile:
        tile, n_blocks, b_padded = B, 1, B             # single full-array block
    else:
        tile = b_tile
        n_blocks = pl.cdiv(B, tile)
        b_padded = n_blocks * tile
        if b_padded != B:
            xT = jnp.pad(xT, ((0, 0), (0, b_padded - B)))

    outT = pl.pallas_call(
        _multihead_kernel,
        grid=(n_blocks,),
        in_specs=[
            pl.BlockSpec(memory_space=pltpu.MemorySpace.SMEM),      # packed params
            pl.BlockSpec((3, tile), lambda i: (0, i)),              # x^T batch tile
        ],
        out_specs=pl.BlockSpec((8, tile), lambda i: (0, i)),
        out_shape=jax.ShapeDtypeStruct((8, b_padded), jnp.float32),
        compiler_params=pltpu.CompilerParams(
            dimension_semantics=("parallel",)),                     # v7x: 2 TCs split batch
    )(packed_params, xT)

    out = outT.T[:B]                                   # (B, 8), drop lane padding
    return out[:, :4], out[:, 4:]


def init_params(key):
    """Deterministic init mimicking nn.Linear (uniform +-1/sqrt(fan_in))."""
    def linear(key, fan_in, fan_out):
        kw, kb = jax.random.split(key)
        bound = 1.0 / (fan_in ** 0.5)
        w = jax.random.uniform(kw, (fan_in, fan_out), jnp.float32, -bound, bound)
        b = jax.random.uniform(kb, (1, fan_out), jnp.float32, -bound, bound)
        return w, b

    k1, k2, k3 = jax.random.split(key, 3)
    w1, b1 = linear(k1, 3, 2)
    wh1, bh1 = linear(k2, 2, 4)
    wh2, bh2 = linear(k3, 2, 4)
    return {"w1": w1, "b1": b1, "wh1": wh1, "bh1": bh1, "wh2": wh2, "bh2": bh2}


if __name__ == "__main__":
    key = jax.random.PRNGKey(0)
    kx, kx2, kp = jax.random.split(key, 3)

    params = init_params(kp)
    packed = pack_params(params)   # hoisted out of the forward path (done once)

    def ref_forward(x):            # plain-JAX reference, original two-stage math
        feat = x @ params["w1"] + params["b1"]
        return (feat @ params["wh1"] + params["bh1"],
                feat @ params["wh2"] + params["bh2"])

    # --- small-batch check (single full-array block, grid=(1,)) ---
    B = 8
    x = jax.random.normal(kx, (B, 3), jnp.float32)
    out1, out2 = jax.block_until_ready(multihead_forward(x, packed))
    ref1, ref2 = ref_forward(x)
    assert out1.shape == (B, 4) and out2.shape == (B, 4)
    assert jnp.allclose(out1, ref1, atol=1e-5, rtol=1e-5)
    assert jnp.allclose(out2, ref2, atol=1e-5, rtol=1e-5)

    # --- larger batch exercising the tiled "parallel" grid + lane padding path ---
    B2 = 1000   # not a multiple of the 512-lane tile on purpose
    x2 = jax.random.normal(kx2, (B2, 3), jnp.float32)
    o1, o2 = jax.block_until_ready(multihead_forward(x2, packed))
    r1, r2 = ref_forward(x2)
    assert jnp.allclose(o1, r1, atol=1e-5, rtol=1e-5)
    assert jnp.allclose(o2, r2, atol=1e-5, rtol=1e-5)

    print("KERNEL_OK")
</pallas_src>

<mosaic_0001>
module attributes {stable_mosaic.version = 11 : i64} {
  func.func @_multihead_kernel(%arg0: i32, %arg1: memref<32xf32, #tpu.memory_space<smem>>, %arg2: memref<3x8xf32, #tpu.memory_space<vmem>>, %arg3: memref<8x8xf32, #tpu.memory_space<vmem>>) attributes {dimension_semantics = [#tpu.dimension_semantics<parallel>], iteration_bounds = array<i64: 1>, scalar_prefetch = 0 : i64, scratch_operands = 0 : i64, tpu.core_type = #tpu.core_type<tc>, window_params = [{transform_indices = @transform_0, window_bounds = array<i64: 32>}, {transform_indices = @transform_1, window_bounds = array<i64: 3, 8>}, {transform_indices = @transform_2, window_bounds = array<i64: 8, 8>}]} {
    %c0 = arith.constant 0 : index
    %c0_0 = arith.constant 0 : index
    %0 = vector.load %arg2[%c0, %c0_0] : memref<3x8xf32, #tpu.memory_space<vmem>>, vector<1x8xf32>
    %c1 = arith.constant 1 : index
    %c0_1 = arith.constant 0 : index
    %1 = vector.load %arg2[%c1, %c0_1] : memref<3x8xf32, #tpu.memory_space<vmem>>, vector<1x8xf32>
    %c2 = arith.constant 2 : index
    %c0_2 = arith.constant 0 : index
    %2 = vector.load %arg2[%c2, %c0_2] : memref<3x8xf32, #tpu.memory_space<vmem>>, vector<1x8xf32>
    %c0_3 = arith.constant 0 : index
    %3 = memref.load %arg1[%c0_3] : memref<32xf32, #tpu.memory_space<smem>>
    %4 = vector.broadcast %3 : f32 to vector<1x8xf32>
    %5 = arith.mulf %4, %0 : vector<1x8xf32>
    %c2_4 = arith.constant 2 : index
    %6 = memref.load %arg1[%c2_4] : memref<32xf32, #tpu.memory_space<smem>>
    %7 = vector.broadcast %6 : f32 to vector<1x8xf32>
    %8 = arith.mulf %7, %1 : vector<1x8xf32>
    %9 = arith.addf %5, %8 : vector<1x8xf32>
    %c4 = arith.constant 4 : index
    %10 = memref.load %arg1[%c4] : memref<32xf32, #tpu.memory_space<smem>>
    %11 = vector.broadcast %10 : f32 to vector<1x8xf32>
    %12 = arith.mulf %11, %2 : vector<1x8xf32>
    %13 = arith.addf %9, %12 : vector<1x8xf32>
    %c6 = arith.constant 6 : index
    %14 = memref.load %arg1[%c6] : memref<32xf32, #tpu.memory_space<smem>>
    %15 = vector.broadcast %14 : f32 to vector<1x8xf32>
    %16 = arith.addf %13, %15 : vector<1x8xf32>
    %c1_5 = arith.constant 1 : index
    %17 = memref.load %arg1[%c1_5] : memref<32xf32, #tpu.memory_space<smem>>
    %18 = vector.broadcast %17 : f32 to vector<1x8xf32>
    %19 = arith.mulf %18, %0 : vector<1x8xf32>
    %c3 = arith.constant 3 : index
    %20 = memref.load %arg1[%c3] : memref<32xf32, #tpu.memory_space<smem>>
    %21 = vector.broadcast %20 : f32 to vector<1x8xf32>
    %22 = arith.mulf %21, %1 : vector<1x8xf32>
    %23 = arith.addf %19, %22 : vector<1x8xf32>
    %c5 = arith.constant 5 : index
    %24 = memref.load %arg1[%c5] : memref<32xf32, #tpu.memory_space<smem>>
    %25 = vector.broadcast %24 : f32 to vector<1x8xf32>
    %26 = arith.mulf %25, %2 : vector<1x8xf32>
    %27 = arith.addf %23, %26 : vector<1x8xf32>
    %c7 = arith.constant 7 : index
    %28 = memref.load %arg1[%c7] : memref<32xf32, #tpu.memory_space<smem>>
    %29 = vector.broadcast %28 : f32 to vector<1x8xf32>
    %30 = arith.addf %27, %29 : vector<1x8xf32>
    %c8 = arith.constant 8 : index
    %31 = memref.load %arg1[%c8] : memref<32xf32, #tpu.memory_space<smem>>
    %32 = vector.broadcast %31 : f32 to vector<1x8xf32>
    %33 = arith.mulf %32, %16 : vector<1x8xf32>
    %c16 = arith.constant 16 : index
    %34 = memref.load %arg1[%c16] : memref<32xf32, #tpu.memory_space<smem>>
    %35 = vector.broadcast %34 : f32 to vector<1x8xf32>
    %36 = arith.mulf %35, %30 : vector<1x8xf32>
    %37 = arith.addf %33, %36 : vector<1x8xf32>
    %c24 = arith.constant 24 : index
    %38 = memref.load %arg1[%c24] : memref<32xf32, #tpu.memory_space<smem>>
    %39 = vector.broadcast %38 : f32 to vector<1x8xf32>
    %40 = arith.addf %37, %39 : vector<1x8xf32>
    %c9 = arith.constant 9 : index
    %41 = memref.load %arg1[%c9] : memref<32xf32, #tpu.memory_space<smem>>
    %42 = vector.broadcast %41 : f32 to vector<1x8xf32>
    %43 = arith.mulf %42, %16 : vector<1x8xf32>
    %c17 = arith.constant 17 : index
    %44 = memref.load %arg1[%c17] : memref<32xf32, #tpu.memory_space<smem>>
    %45 = vector.broadcast %44 : f32 to vector<1x8xf32>
    %46 = arith.mulf %45, %30 : vector<1x8xf32>
    %47 = arith.addf %43, %46 : vector<1x8xf32>
    %c25 = arith.constant 25 : index
    %48 = memref.load %arg1[%c25] : memref<32xf32, #tpu.memory_space<smem>>
    %49 = vector.broadcast %48 : f32 to vector<1x8xf32>
    %50 = arith.addf %47, %49 : vector<1x8xf32>
    %c10 = arith.constant 10 : index
    %51 = memref.load %arg1[%c10] : memref<32xf32, #tpu.memory_space<smem>>
    %52 = vector.broadcast %51 : f32 to vector<1x8xf32>
    %53 = arith.mulf %52, %16 : vector<1x8xf32>
    %c18 = arith.constant 18 : index
    %54 = memref.load %arg1[%c18] : memref<32xf32, #tpu.memory_space<smem>>
    %55 = vector.broadcast %54 : f32 to vector<1x8xf32>
    %56 = arith.mulf %55, %30 : vector<1x8xf32>
    %57 = arith.addf %53, %56 : vector<1x8xf32>
    %c26 = arith.constant 26 : index
    %58 = memref.load %arg1[%c26] : memref<32xf32, #tpu.memory_space<smem>>
    %59 = vector.broadcast %58 : f32 to vector<1x8xf32>
    %60 = arith.addf %57, %59 : vector<1x8xf32>
    %c11 = arith.constant 11 : index
    %61 = memref.load %arg1[%c11] : memref<32xf32, #tpu.memory_space<smem>>
    %62 = vector.broadcast %61 : f32 to vector<1x8xf32>
    %63 = arith.mulf %62, %16 : vector<1x8xf32>
    %c19 = arith.constant 19 : index
    %64 = memref.load %arg1[%c19] : memref<32xf32, #tpu.memory_space<smem>>
    %65 = vector.broadcast %64 : f32 to vector<1x8xf32>
    %66 = arith.mulf %65, %30 : vector<1x8xf32>
    %67 = arith.addf %63, %66 : vector<1x8xf32>
    %c27 = arith.constant 27 : index
    %68 = memref.load %arg1[%c27] : memref<32xf32, #tpu.memory_space<smem>>
    %69 = vector.broadcast %68 : f32 to vector<1x8xf32>
    %70 = arith.addf %67, %69 : vector<1x8xf32>
    %c12 = arith.constant 12 : index
    %71 = memref.load %arg1[%c12] : memref<32xf32, #tpu.memory_space<smem>>
    %72 = vector.broadcast %71 : f32 to vector<1x8xf32>
    %73 = arith.mulf %72, %16 : vector<1x8xf32>
    %c20 = arith.constant 20 : index
    %74 = memref.load %arg1[%c20] : memref<32xf32, #tpu.memory_space<smem>>
    %75 = vector.broadcast %74 : f32 to vector<1x8xf32>
    %76 = arith.mulf %75, %30 : vector<1x8xf32>
    %77 = arith.addf %73, %76 : vector<1x8xf32>
    %c28 = arith.constant 28 : index
    %78 = memref.load %arg1[%c28] : memref<32xf32, #tpu.memory_space<smem>>
    %79 = vector.broadcast %78 : f32 to vector<1x8xf32>
    %80 = arith.addf %77, %79 : vector<1x8xf32>
    %c13 = arith.constant 13 : index
    %81 = memref.load %arg1[%c13] : memref<32xf32, #tpu.memory_space<smem>>
    %82 = vector.broadcast %81 : f32 to vector<1x8xf32>
    %83 = arith.mulf %82, %16 : vector<1x8xf32>
    %c21 = arith.constant 21 : index
    %84 = memref.load %arg1[%c21] : memref<32xf32, #tpu.memory_space<smem>>
    %85 = vector.broadcast %84 : f32 to vector<1x8xf32>
    %86 = arith.mulf %85, %30 : vector<1x8xf32>
    %87 = arith.addf %83, %86 : vector<1x8xf32>
    %c29 = arith.constant 29 : index
    %88 = memref.load %arg1[%c29] : memref<32xf32, #tpu.memory_space<smem>>
    %89 = vector.broadcast %88 : f32 to vector<1x8xf32>
    %90 = arith.addf %87, %89 : vector<1x8xf32>
    %c14 = arith.constant 14 : index
    %91 = memref.load %arg1[%c14] : memref<32xf32, #tpu.memory_space<smem>>
    %92 = vector.broadcast %91 : f32 to vector<1x8xf32>
    %93 = arith.mulf %92, %16 : vector<1x8xf32>
    %c22 = arith.constant 22 : index
    %94 = memref.load %arg1[%c22] : memref<32xf32, #tpu.memory_space<smem>>
    %95 = vector.broadcast %94 : f32 to vector<1x8xf32>
    %96 = arith.mulf %95, %30 : vector<1x8xf32>
    %97 = arith.addf %93, %96 : vector<1x8xf32>
    %c30 = arith.constant 30 : index
    %98 = memref.load %arg1[%c30] : memref<32xf32, #tpu.memory_space<smem>>
    %99 = vector.broadcast %98 : f32 to vector<1x8xf32>
    %100 = arith.addf %97, %99 : vector<1x8xf32>
    %c15 = arith.constant 15 : index
    %101 = memref.load %arg1[%c15] : memref<32xf32, #tpu.memory_space<smem>>
    %102 = vector.broadcast %101 : f32 to vector<1x8xf32>
    %103 = arith.mulf %102, %16 : vector<1x8xf32>
    %c23 = arith.constant 23 : index
    %104 = memref.load %arg1[%c23] : memref<32xf32, #tpu.memory_space<smem>>
    %105 = vector.broadcast %104 : f32 to vector<1x8xf32>
    %106 = arith.mulf %105, %30 : vector<1x8xf32>
    %107 = arith.addf %103, %106 : vector<1x8xf32>
    %c31 = arith.constant 31 : index
    %108 = memref.load %arg1[%c31] : memref<32xf32, #tpu.memory_space<smem>>
    %109 = vector.broadcast %108 : f32 to vector<1x8xf32>
    %110 = arith.addf %107, %109 : vector<1x8xf32>
    %111 = tpu.concatenate %40, %50, %60, %70, %80, %90, %100, %110 in 0 : vector<1x8xf32>, vector<1x8xf32>, vector<1x8xf32>, vector<1x8xf32>, vector<1x8xf32>, vector<1x8xf32>, vector<1x8xf32>, vector<1x8xf32> -> vector<8x8xf32>
    %c0_6 = arith.constant 0 : index
    %c0_7 = arith.constant 0 : index
    %112 = vector.load %arg3[%c0_6, %c0_7] : memref<8x8xf32, #tpu.memory_space<vmem>>, vector<8x8xf32>
    tpu.vector_store %arg3[%c0_6, %c0_7], %111 {strides = array<i32>} : memref<8x8xf32, #tpu.memory_space<vmem>>, vector<8x8xf32>,
    return
  }
  func.func @transform_0(%arg0: i32) -> i32 {
    %c0_i32 = arith.constant 0 : i32
    %c0_i32_0 = arith.constant 0 : i32
    return %c0_i32 : i32
  }
  func.func @transform_1(%arg0: i32) -> (i32, i32) {
    %c0_i32 = arith.constant 0 : i32
    %c0_i32_0 = arith.constant 0 : i32
    return %c0_i32, %arg0 : i32, i32
  }
  func.func @transform_2(%arg0: i32) -> (i32, i32) {
    %c0_i32 = arith.constant 0 : i32
    %c0_i32_0 = arith.constant 0 : i32
    return %c0_i32, %arg0 : i32, i32
  }
}

</mosaic_0001>

<bundles_post_ra>
// kernel: multihead_forward.1
= control target key start
LH: loop header
LB: loop body
LE: loop exit
PB: predicated region body
PF: predicated region fallthrough
CT: control target
= control target key end

     0   :  { %7 = vsyncpa [#allocation4], 0  ;;  %s336_s0 = inlined_call_operand.vmem [shape: f32[32], index: 0, kind: input, shape index: {}]   ;;  %s337_s1 = inlined_call_operand.hbm [shape: f32[3,8], index: 1, kind: input, shape index: {}]   ;;  %s338_s2 = inlined_call_operand.vmem [shape: f32[8,8], index: 2, kind: output, shape index: {}]  }
   0x1   :  { %s14_s11 = sshll.u32 %s336_s0, 4  ;;  %s15_s11 = int_to_ptr.vmem [resolvable:$true] %s14_s11 }
   0x2   :  { %8 = vsyncpa [#allocation3], 0  ;;  %s23_s14 = sshll.u32 %s337_s1, 4  ;;  %s265_s15 = smov [#allocation2]   ;;  %s24_s14 = int_to_ptr.hbm [resolvable:$true] %s23_s14 }
   0x3   :  { %17 = dma.vmem_to_smem %s15_s11, 16, %s265_s15, [#allocation4]  }
   0x4   :  { %s266_s16 = smov [#allocation5]  }
   0x5   :  { %s25_s17 = sshll.u32 %s266_s16, 4  ;;  %s26_s17 = int_to_ptr.vmem [resolvable:$true] %s25_s17 }
   0x6   :  { %28 = dma.hbm_to_vmem [thread:$0]  %s24_s14, 64, %s26_s17, [#allocation3]  }
   0x7   :  { %261 = dma.done.wait [#allocation4], 16  }
   0x8   :  { %262 = vsyncadd [#allocation4], 4294967280 }
   0x9   :  { %263 = dma.done.wait [#allocation3], 64  }
   0xa   :  { %264 = vsyncadd [#allocation3], 4294967232 }
   0xb   :  { %37 = sfence }
   0xc   :  { %s41_s18 = sld [smem:[#allocation2]]  ;;  %v38_v0 = vld [vmem:[#allocation5] sm:$0x1]  ;;  %v39_v1 = vld [vmem:[#allocation5 + $0x1] sm:$0x1]  ;;  %vm170_vm0 = vcmask 1040384  }
   0xd   :  { %s192_s0 = sld [smem:[#allocation2 + $0x2]]  ;;  %v40_v2 = vld [vmem:[#allocation5 + $0x2] sm:$0x1]  ;;  %vm172_vm1 = vcmask 1041408   ;;  %vm174_vm2 = vcmask 1042432   ;;  %vm176_vm3 = vcmask 1043456  }
   0xe   :  { %s193_s19 = sld [smem:[#allocation2 + $0x4]]  ;;  %vm178_vm4 = vcmask 1044480   ;;  %vm180_vm5 = vcmask 1045504   ;;  %vm182_vm6 = vcmask 1046528   ;;  %vm184_vm7 = vcmask 64512  }
   0xf   :  { %s194_s20 = sld [smem:[#allocation2 + $0x6]] }
  0x10   :  { %s195_s21 = sld [smem:[#allocation2 + $0x1]] }
  0x11   :  { %s196_s1 = sld [smem:[#allocation2 + $0x3]] }
  0x12   :  { %v42_v3 = vstv %s41_s18  ;;  %s197_s22 = sld [smem:[#allocation2 + $0x5]] }
  0x13   :  { %v43_v4 = vmul.f32 %v42_v3, %v38_v0  ;;  %v45_v5 = vstv %s192_s0  ;;  %s198_s23 = sld [smem:[#allocation2 + $0x7]] }
  0x14   :  { %v46_v6 = vmul.f32 %v45_v5, %v39_v1  ;;  %v49_v7 = vstv %s193_s19  ;;  %s199_s24 = sld [smem:[#allocation2 + $0x8]] }
  0x15   :  { %v50_v8 = vmul.f32 %v49_v7, %v40_v2  ;;  %s288_s25 = sld [smem:[#allocation2 + $0x10]]  ;;  %v53_v11 = vstv %s194_s20 }
  0x16   :  { %v47_v9 = vadd.f32 %v46_v6, %v43_v4  ;;  %v56_v10 = vstv %s195_s21  ;;  %s290_s26 = sld [smem:[#allocation2 + $0x18]] }
  0x17   :  { %v57_v12 = vmul.f32 %v56_v10, %v38_v0  ;;  %v59_v13 = vstv %s196_s1  ;;  %s202_s27 = sld [smem:[#allocation2 + $0x9]] }
  0x18   :  { %v51_v14 = vadd.f32 %v50_v8, %v47_v9  ;;  %v60_v15 = vmul.f32 %v59_v13, %v39_v1  ;;  %v63_v16 = vstv %s197_s22  ;;  %s203_s28 = sld [smem:[#allocation2 + $0x11]] }
  0x19   :  { %v64_v17 = vmul.f32 %v63_v16, %v40_v2  ;;  %s292_s29 = sld [smem:[#allocation2 + $0x19]]  ;;  %v67_v20 = vstv %s198_s23 }
  0x1a   :  { %v294_v18 = vadd.f32 %v53_v11, %v51_v14  ;;  %v61_v19 = vadd.f32 %v60_v15, %v57_v12  ;;  %s205_s30 = sld [smem:[#allocation2 + $0xa]]  ;;  %v70_v21 = vstv %s199_s24 }
  0x1b   :  { %s206_s3 = sld [smem:[#allocation2 + $0x12]]  ;;  %v73_v23 = vstv %s288_s25 }
  0x1c   :  { %v65_v22 = vadd.f32 %v64_v17, %v61_v19  ;;  %s296_s4 = sld [smem:[#allocation2 + $0x1a]]  ;;  %v71_v26 = vmul.f32 %v70_v21, %v294_v18  ;;  %v77_v36 = vstv %s290_s26 }
  0x1d   :  { %v80_v24 = vstv %s202_s27  ;;  %s208_s5 = sld [smem:[#allocation2 + $0xb]] }
  0x1e   :  { %v299_v25 = vadd.f32 %v67_v20, %v65_v22  ;;  %v81_v27 = vmul.f32 %v80_v24, %v294_v18  ;;  %v83_v28 = vstv %s203_s28  ;;  %s209_s6 = sld [smem:[#allocation2 + $0x13]] }
  0x1f   :  { %s303_s7 = sld [smem:[#allocation2 + $0x1b]]  ;;  %v87_v32 = vstv %s292_s29 }
  0x20   :  { %v74_v29 = vmul.f32 %v73_v23, %v299_v25  ;;  %v84_v30 = vmul.f32 %v83_v28, %v299_v25  ;;  %v90_v31 = vstv %s205_s30  ;;  %s211_s8 = sld [smem:[#allocation2 + $0xc]] }
  0x21   :  { %v91_v33 = vmul.f32 %v90_v31, %v294_v18  ;;  %v93_v34 = vstv %s206_s3  ;;  %s212_s9 = sld [smem:[#allocation2 + $0x14]] }
  0x22   :  { %v75_v35 = vadd.f32 %v74_v29, %v71_v26  ;;  %v85_v37 = vadd.f32 %v84_v30, %v81_v27  ;;  %v94_v38 = vmul.f32 %v93_v34, %v299_v25  ;;  %s311_s10 = sld [smem:[#allocation2 + $0x1c]]  ;;  %v97_v39 = vstv %s296_s4 }
  0x23   :  { %v100_v40 = vstv %s208_s5  ;;  %s214_s11 = sld [smem:[#allocation2 + $0xd]] }
  0x24   :  { %v88_v41 = vadd.f32 %v87_v32, %v85_v37  ;;  %v95_v42 = vadd.f32 %v94_v38, %v91_v33  ;;  %v101_v43 = vmul.f32 %v100_v40, %v294_v18  ;;  %s215_s12 = sld [smem:[#allocation2 + $0x15]]  ;;  %v78_v44 = vadd.f32 %v77_v36, %v75_v35 }
  0x25   :  { %v103_v45 = vstv %s209_s6  ;;  %s315_s13 = sld [smem:[#allocation2 + $0x1d]]  ;;  %v107_v50 = vstv %s303_s7 }
  0x26   :  { %v98_v46 = vadd.f32 %v97_v39, %v95_v42  ;;  %v104_v47 = vmul.f32 %v103_v45, %v299_v25  ;;  %v110_v48 = vstv %s211_s8  ;;  %s217_s14 = sld [smem:[#allocation2 + $0xe]]  ;;  %v150_v49 = vrot.slane %v88_v41, 7 }
  0x27   :  { %v111_v51 = vmul.f32 %v110_v48, %v294_v18  ;;  %v113_v52 = vstv %s212_s9  ;;  %s218_s15 = sld [smem:[#allocation2 + $0x16]] }
  0x28   :  { %v105_v53 = vadd.f32 %v104_v47, %v101_v43  ;;  %v114_v54 = vmul.f32 %v113_v52, %v299_v25  ;;  %s321_s16 = sld [smem:[#allocation2 + $0x1e]]  ;;  %v153_v55 = vrot.slane %v98_v46, 6  ;;  %v117_v56 = vstv %s311_s10 }
  0x29   :  { %v120_v57 = vstv %s214_s11  ;;  %s220_s17 = sld [smem:[#allocation2 + $0xf]]  ;;  %v171_v58 = vsel %vm170_vm0, %v78_v44, %v150_v49 }
  0x2a   :  { %v108_v59 = vadd.f32 %v107_v50, %v105_v53  ;;  %v115_v60 = vadd.f32 %v114_v54, %v111_v51  ;;  %v121_v61 = vmul.f32 %v120_v57, %v294_v18  ;;  %v123_v62 = vstv %s215_s12  ;;  %s221_s18 = sld [smem:[#allocation2 + $0x17]] }
  0x2b   :  { %v124_v63 = vmul.f32 %v123_v62, %v299_v25  ;;  %s222_s0 = sld [smem:[#allocation2 + $0x1f]]  ;;  %v173_v0 = vsel %vm172_vm1, %v171_v58, %v153_v55  ;;  %v127_v2 = vstv %s315_s13 }
  0x2c   :  { %v118_v1 = vadd.f32 %v117_v56, %v115_v60  ;;  %v130_v3 = vstv %s217_s14  ;;  %v156_v4 = vrot.slane %v108_v59, 5 }
  0x2d   :  { %v125_v5 = vadd.f32 %v124_v63, %v121_v61  ;;  %v131_v6 = vmul.f32 %v130_v3, %v294_v18  ;;  %v133_v7 = vstv %s218_s15 }
  0x2e   :  { %v134_v8 = vmul.f32 %v133_v7, %v299_v25  ;;  %v159_v9 = vrot.slane %v118_v1, 4  ;;  %v175_v10 = vsel %vm174_vm2, %v173_v0, %v156_v4  ;;  %v137_v12 = vstv %s321_s16 }
  0x2f   :  { %v128_v11 = vadd.f32 %v127_v2, %v125_v5  ;;  %v140_v13 = vstv %s220_s17 }
  0x30   :  { %v135_v14 = vadd.f32 %v134_v8, %v131_v6  ;;  %v141_v15 = vmul.f32 %v140_v13, %v294_v18  ;;  %v143_v16 = vstv %s221_s18  ;;  %v177_v17 = vsel %vm176_vm3, %v175_v10, %v159_v9 }
  0x31   :  { %v144_v19 = vmul.f32 %v143_v16, %v299_v25  ;;  %v162_v20 = vrot.slane %v128_v11, 3  ;;  %v147_v22 = vstv %s222_s0 }
  0x32   :  { %v138_v21 = vadd.f32 %v137_v12, %v135_v14 }
  0x33   :  { %v145_v23 = vadd.f32 %v144_v19, %v141_v15  ;;  %v179_v24 = vsel %vm178_vm4, %v177_v17, %v162_v20 }
  0x34   :  { %v165_v26 = vrot.slane %v138_v21, 2 }
  0x35   :  { %v148_v27 = vadd.f32 %v147_v22, %v145_v23 }
  0x36   :  { %v181_v28 = vsel %vm180_vm5, %v179_v24, %v165_v26 }
  0x37   :  { %v168_v29 = vrot.slane %v148_v27, 1 }
  0x39   :  { %v183_v30 = vsel %vm182_vm6, %v181_v28, %v168_v29 }
  0x3a   :  { %185 = vst.msk [vmem:[%s338_s2] sm:$0xff] %vm184_vm7, %v183_v30 }
  0x3b   :  { %190 = vsyncpa [#allocation3], 1 }
  0x3c   :  { %191 = vsyncpa [#allocation4], 1 }

</bundles_post_ra>
